<compile_context>
chip_gen: v5e
topology: v5e:2x2
jax: 0.10.0
libtpu: 0.0.40
codegen_flags: <defaults>
</compile_context>

<pallas_src>
import functools

import jax
import jax.numpy as jnp
from jax import lax
from jax.experimental import pallas as pl
from jax.experimental.pallas import tpu as pltpu


def _uniform_bits(seed_u32, layer, row0_u32, shape, n_cols):
    """Counter-based uniform uint32 bits per element.

    Pure jnp integer ops (VPU only), so it works both on TPU hardware and in
    interpret mode. Unique counter per (global row, col); mixed with seed and
    layer index, then run through a murmur3/xxhash-style avalanche finalizer.
    """
    rows = lax.broadcasted_iota(jnp.int32, shape, 0).astype(jnp.uint32) + row0_u32
    cols = lax.broadcasted_iota(jnp.int32, shape, 1).astype(jnp.uint32)
    x = rows * jnp.uint32(n_cols) + cols
    x = x + seed_u32 * jnp.uint32(0x9E3779B1)
    x = x + jnp.uint32(layer) * jnp.uint32(0x85EBCA77)
    x = x ^ (x >> jnp.uint32(16))
    x = x * jnp.uint32(0x7FEB352D)
    x = x ^ (x >> jnp.uint32(15))
    x = x * jnp.uint32(0x846CA68B)
    x = x ^ (x >> jnp.uint32(16))
    return x


def _prenet_fused_kernel(seed_ref, x_ref, *args, dropout_rate, tm, n_layers):
    """Fused prenet: for each layer, h = dropout(relu(h @ W_l + b_l))."""
    o_ref = args[-1]
    wb_refs = args[:-1]                       # w0, b0, w1, b1, ...

    seed = seed_ref[0].astype(jnp.uint32)
    row0 = (pl.program_id(0) * tm).astype(jnp.uint32)

    apply_dropout = dropout_rate > 0.0        # static Python decision
    if dropout_rate >= 1.0:
        scale = jnp.float32(0.0)
        keep_thr = jnp.uint32(0)
    else:
        scale = jnp.float32(1.0 / (1.0 - dropout_rate))
        keep_thr = jnp.uint32(min(int((1.0 - dropout_rate) * (2 ** 32)),
                                  (2 ** 32) - 1))

    h = x_ref[...]                            # bf16 tile (tm, K)
    for layer in range(n_layers):
        w_ref = wb_refs[2 * layer]
        b_ref = wb_refs[2 * layer + 1]
        n_units = w_ref.shape[1]
        # MXU matmul, bf16 operands, f32 accumulation.
        z = jnp.dot(h.astype(w_ref.dtype), w_ref[...],
                    preferred_element_type=jnp.float32)
        z = jnp.maximum(z + b_ref[...], 0.0)  # bias + ReLU on the VPU (f32)
        if apply_dropout:
            bits = _uniform_bits(seed, layer, row0, z.shape, n_units)
            z = jnp.where(bits < keep_thr, z * scale, 0.0)
        h = z                                 # f32 going into next layer

    o_ref[...] = h.astype(o_ref.dtype)


def prenet_forward(x, params, dropout_rate=0.5, seed=0, block_m=512):
    """Prenet forward. x: (B, ..., idim) -> (B, ..., n_units). Dropout always on."""
    lead_shape = x.shape[:-1]
    idim = x.shape[-1]
    n_layers = len(params)
    n_units = params[-1][0].shape[1]

    h = x.reshape(-1, idim)
    m = h.shape[0]
    tm = min(int(block_m), m)
    # Pad rows so every grid tile is full (keeps (8,128)-style tiling simple).
    m_pad = pl.cdiv(m, tm) * tm
    if m_pad != m:
        h = jnp.pad(h, ((0, m_pad - m), (0, 0)))

    # bf16 MXU operands; f32 bias / accumulation / output.
    h = h.astype(jnp.bfloat16)
    flat_inputs = []
    in_specs = [pl.BlockSpec((tm, idim), lambda i, s: (i, 0))]
    for (w, b) in params:
        k, n = w.shape
        flat_inputs.append(w.astype(jnp.bfloat16))
        flat_inputs.append(b.astype(jnp.float32).reshape(1, n))
        in_specs.append(pl.BlockSpec((k, n), lambda i, s: (0, 0)))   # resident
        in_specs.append(pl.BlockSpec((1, n), lambda i, s: (0, 0)))   # resident

    kernel = functools.partial(
        _prenet_fused_kernel,
        dropout_rate=float(dropout_rate), tm=tm, n_layers=n_layers)

    out = pl.pallas_call(
        kernel,
        out_shape=jax.ShapeDtypeStruct((m_pad, n_units), jnp.float32),
        grid_spec=pltpu.PrefetchScalarGridSpec(
            num_scalar_prefetch=1,                 # dropout seed in SMEM
            grid=(m_pad // tm,),
            in_specs=in_specs,
            out_specs=pl.BlockSpec((tm, n_units), lambda i, s: (i, 0)),
        ),
        compiler_params=pltpu.CompilerParams(
            dimension_semantics=("parallel",),     # M-tiles independent (v7x megacore)
        ),
    )(jnp.asarray([seed], jnp.int32), h, *flat_inputs)

    out = out[:m]
    return out.reshape(*lead_shape, n_units)


def init_prenet_params(key, idim, n_layers=2, n_units=256):
    """Deterministic init mimicking torch.nn.Linear (uniform(-1/sqrt(fan_in), +))."""
    params = []
    for layer in range(n_layers):
        n_in = idim if layer == 0 else n_units
        key, kw, kb = jax.random.split(key, 3)
        bound = 1.0 / float(jnp.sqrt(jnp.float32(n_in)))
        w = jax.random.uniform(kw, (n_in, n_units), jnp.float32, -bound, bound)
        b = jax.random.uniform(kb, (1, n_units), jnp.float32, -bound, bound)
        params.append((w, b))
    return params


if __name__ == "__main__":
    # Small, forward-consistent shapes: batch=2, seq=8, idim=32, n_units=32.
    B, T, IDIM, N_UNITS, N_LAYERS = 2, 8, 32, 32, 2
    DROPOUT = 0.5

    key = jax.random.PRNGKey(0)
    key, kx = jax.random.split(key)
    x = jax.random.normal(kx, (B, T, IDIM), jnp.float32)

    params = init_prenet_params(key, IDIM, n_layers=N_LAYERS, n_units=N_UNITS)

    out = prenet_forward(x, params, dropout_rate=DROPOUT, seed=1234)
    out = jax.block_until_ready(out)

    assert out.shape == (B, T, N_UNITS), out.shape
    assert out.dtype == jnp.float32
    # ReLU + zero-out dropout => all outputs are >= 0 and finite.
    assert bool(jnp.all(out >= 0.0))
    assert bool(jnp.all(jnp.isfinite(out)))
    print("KERNEL_OK")
</pallas_src>

<mosaic_0001>
module attributes {stable_mosaic.version = 11 : i64} {
  func.func @_prenet_fused_kernel(%arg0: i32, %arg1: memref<1xi32, #tpu.memory_space<smem>>, %arg2: memref<16x32xbf16, #tpu.memory_space<vmem>>, %arg3: memref<32x32xbf16, #tpu.memory_space<vmem>>, %arg4: memref<1x32xf32, #tpu.memory_space<vmem>>, %arg5: memref<32x32xbf16, #tpu.memory_space<vmem>>, %arg6: memref<1x32xf32, #tpu.memory_space<vmem>>, %arg7: memref<16x32xf32, #tpu.memory_space<vmem>>) attributes {dimension_semantics = [#tpu.dimension_semantics<parallel>], iteration_bounds = array<i64: 1>, scalar_prefetch = 1 : i64, scratch_operands = 0 : i64, tpu.core_type = #tpu.core_type<tc>, window_params = [{transform_indices = @transform_0, window_bounds = array<i64: 16, 32>}, {pipeline_mode = #tpu.pipeline_mode<synchronous>, transform_indices = @transform_1, window_bounds = array<i64: 32, 32>}, {pipeline_mode = #tpu.pipeline_mode<synchronous>, transform_indices = @transform_2, window_bounds = array<i64: 1, 32>}, {pipeline_mode = #tpu.pipeline_mode<synchronous>, transform_indices = @transform_3, window_bounds = array<i64: 32, 32>}, {pipeline_mode = #tpu.pipeline_mode<synchronous>, transform_indices = @transform_4, window_bounds = array<i64: 1, 32>}, {transform_indices = @transform_5, window_bounds = array<i64: 16, 32>}]} {
    %c0 = arith.constant 0 : index
    %0 = memref.load %arg1[%c0] : memref<1xi32, #tpu.memory_space<smem>>
    %c16_i32 = arith.constant 16 : i32
    %1 = arith.muli %arg0, %c16_i32 : i32
    %c0_0 = arith.constant 0 : index
    %c0_1 = arith.constant 0 : index
    %2 = vector.load %arg2[%c0_0, %c0_1] : memref<16x32xbf16, #tpu.memory_space<vmem>>, vector<16x32xbf16>
    %c0_2 = arith.constant 0 : index
    %c0_3 = arith.constant 0 : index
    %3 = vector.load %arg3[%c0_2, %c0_3] : memref<32x32xbf16, #tpu.memory_space<vmem>>, vector<32x32xbf16>
    %cst = arith.constant dense<0.000000e+00> : vector<16x32xf32>
    %4 = tpu.matmul %2, %3, %cst {dimension_numbers = #tpu.dot_dimension_numbers<[1], [0], [0], [1], [0, 0, 1, 1], [], []>} : vector<16x32xbf16>, vector<32x32xbf16>, vector<16x32xf32> -> vector<16x32xf32>
    %c0_4 = arith.constant 0 : index
    %c0_5 = arith.constant 0 : index
    %5 = vector.load %arg4[%c0_4, %c0_5] : memref<1x32xf32, #tpu.memory_space<vmem>>, vector<1x32xf32>
    %6 = vector.broadcast %5 : vector<1x32xf32> to vector<16x32xf32>
    %7 = arith.addf %4, %6 : vector<16x32xf32>
    %cst_6 = arith.constant 0.000000e+00 : f32
    %8 = vector.broadcast %cst_6 : f32 to vector<16x32xf32>
    %9 = arith.maximumf %7, %8 : vector<16x32xf32>
    %10 = tpu.iota {dimensions = array<i32: 0>} : vector<16x32xi32>
    %11 = vector.broadcast %1 : i32 to vector<16x32xi32>
    %12 = arith.addi %10, %11 : vector<16x32xi32>
    %13 = tpu.iota {dimensions = array<i32: 1>} : vector<16x32xi32>
    %c32_i32 = arith.constant 32 : i32
    %14 = vector.broadcast %c32_i32 : i32 to vector<16x32xi32>
    %15 = arith.muli %12, %14 : vector<16x32xi32>
    %16 = arith.addi %15, %13 : vector<16x32xi32>
    %c-1640531535_i32 = arith.constant -1640531535 : i32
    %17 = arith.muli %0, %c-1640531535_i32 : i32
    %18 = vector.broadcast %17 : i32 to vector<16x32xi32>
    %19 = arith.addi %16, %18 : vector<16x32xi32>
    %c0_i32 = arith.constant 0 : i32
    %c-2048144777_i32 = arith.constant -2048144777 : i32
    %20 = arith.muli %c0_i32, %c-2048144777_i32 : i32
    %21 = vector.broadcast %20 : i32 to vector<16x32xi32>
    %22 = arith.addi %19, %21 : vector<16x32xi32>
    %c16_i32_7 = arith.constant 16 : i32
    %23 = vector.broadcast %c16_i32_7 : i32 to vector<16x32xi32>
    %24 = arith.shrui %22, %23 : vector<16x32xi32>
    %25 = arith.xori %22, %24 : vector<16x32xi32>
    %c2146121005_i32 = arith.constant 2146121005 : i32
    %26 = vector.broadcast %c2146121005_i32 : i32 to vector<16x32xi32>
    %27 = arith.muli %25, %26 : vector<16x32xi32>
    %c15_i32 = arith.constant 15 : i32
    %28 = vector.broadcast %c15_i32 : i32 to vector<16x32xi32>
    %29 = arith.shrui %27, %28 : vector<16x32xi32>
    %30 = arith.xori %27, %29 : vector<16x32xi32>
    %c-2073254261_i32 = arith.constant -2073254261 : i32
    %31 = vector.broadcast %c-2073254261_i32 : i32 to vector<16x32xi32>
    %32 = arith.muli %30, %31 : vector<16x32xi32>
    %c16_i32_8 = arith.constant 16 : i32
    %33 = vector.broadcast %c16_i32_8 : i32 to vector<16x32xi32>
    %34 = arith.shrui %32, %33 : vector<16x32xi32>
    %35 = arith.xori %32, %34 : vector<16x32xi32>
    %c-2147483648_i32 = arith.constant -2147483648 : i32
    %36 = vector.broadcast %c-2147483648_i32 : i32 to vector<16x32xi32>
    %37 = arith.cmpi ult, %35, %36 : vector<16x32xi32>
    %cst_9 = arith.constant 2.000000e+00 : f32
    %38 = vector.broadcast %cst_9 : f32 to vector<16x32xf32>
    %39 = arith.mulf %9, %38 : vector<16x32xf32>
    %cst_10 = arith.constant 0.000000e+00 : f32
    %40 = vector.broadcast %cst_10 : f32 to vector<16x32xf32>
    %41 = arith.select %37, %39, %40 : vector<16x32xi1>, vector<16x32xf32>
    %42 = arith.truncf %41 : vector<16x32xf32> to vector<16x32xbf16>
    %c0_11 = arith.constant 0 : index
    %c0_12 = arith.constant 0 : index
    %43 = vector.load %arg5[%c0_11, %c0_12] : memref<32x32xbf16, #tpu.memory_space<vmem>>, vector<32x32xbf16>
    %cst_13 = arith.constant dense<0.000000e+00> : vector<16x32xf32>
    %44 = tpu.matmul %42, %43, %cst_13 {dimension_numbers = #tpu.dot_dimension_numbers<[1], [0], [0], [1], [0, 0, 1, 1], [], []>} : vector<16x32xbf16>, vector<32x32xbf16>, vector<16x32xf32> -> vector<16x32xf32>
    %c0_14 = arith.constant 0 : index
    %c0_15 = arith.constant 0 : index
    %45 = vector.load %arg6[%c0_14, %c0_15] : memref<1x32xf32, #tpu.memory_space<vmem>>, vector<1x32xf32>
    %46 = vector.broadcast %45 : vector<1x32xf32> to vector<16x32xf32>
    %47 = arith.addf %44, %46 : vector<16x32xf32>
    %cst_16 = arith.constant 0.000000e+00 : f32
    %48 = vector.broadcast %cst_16 : f32 to vector<16x32xf32>
    %49 = arith.maximumf %47, %48 : vector<16x32xf32>
    %50 = tpu.iota {dimensions = array<i32: 0>} : vector<16x32xi32>
    %51 = vector.broadcast %1 : i32 to vector<16x32xi32>
    %52 = arith.addi %50, %51 : vector<16x32xi32>
    %53 = tpu.iota {dimensions = array<i32: 1>} : vector<16x32xi32>
    %c32_i32_17 = arith.constant 32 : i32
    %54 = vector.broadcast %c32_i32_17 : i32 to vector<16x32xi32>
    %55 = arith.muli %52, %54 : vector<16x32xi32>
    %56 = arith.addi %55, %53 : vector<16x32xi32>
    %c-1640531535_i32_18 = arith.constant -1640531535 : i32
    %57 = arith.muli %0, %c-1640531535_i32_18 : i32
    %58 = vector.broadcast %57 : i32 to vector<16x32xi32>
    %59 = arith.addi %56, %58 : vector<16x32xi32>
    %c1_i32 = arith.constant 1 : i32
    %c-2048144777_i32_19 = arith.constant -2048144777 : i32
    %60 = arith.muli %c1_i32, %c-2048144777_i32_19 : i32
    %61 = vector.broadcast %60 : i32 to vector<16x32xi32>
    %62 = arith.addi %59, %61 : vector<16x32xi32>
    %c16_i32_20 = arith.constant 16 : i32
    %63 = vector.broadcast %c16_i32_20 : i32 to vector<16x32xi32>
    %64 = arith.shrui %62, %63 : vector<16x32xi32>
    %65 = arith.xori %62, %64 : vector<16x32xi32>
    %c2146121005_i32_21 = arith.constant 2146121005 : i32
    %66 = vector.broadcast %c2146121005_i32_21 : i32 to vector<16x32xi32>
    %67 = arith.muli %65, %66 : vector<16x32xi32>
    %c15_i32_22 = arith.constant 15 : i32
    %68 = vector.broadcast %c15_i32_22 : i32 to vector<16x32xi32>
    %69 = arith.shrui %67, %68 : vector<16x32xi32>
    %70 = arith.xori %67, %69 : vector<16x32xi32>
    %c-2073254261_i32_23 = arith.constant -2073254261 : i32
    %71 = vector.broadcast %c-2073254261_i32_23 : i32 to vector<16x32xi32>
    %72 = arith.muli %70, %71 : vector<16x32xi32>
    %c16_i32_24 = arith.constant 16 : i32
    %73 = vector.broadcast %c16_i32_24 : i32 to vector<16x32xi32>
    %74 = arith.shrui %72, %73 : vector<16x32xi32>
    %75 = arith.xori %72, %74 : vector<16x32xi32>
    %c-2147483648_i32_25 = arith.constant -2147483648 : i32
    %76 = vector.broadcast %c-2147483648_i32_25 : i32 to vector<16x32xi32>
    %77 = arith.cmpi ult, %75, %76 : vector<16x32xi32>
    %cst_26 = arith.constant 2.000000e+00 : f32
    %78 = vector.broadcast %cst_26 : f32 to vector<16x32xf32>
    %79 = arith.mulf %49, %78 : vector<16x32xf32>
    %cst_27 = arith.constant 0.000000e+00 : f32
    %80 = vector.broadcast %cst_27 : f32 to vector<16x32xf32>
    %81 = arith.select %77, %79, %80 : vector<16x32xi1>, vector<16x32xf32>
    %c0_28 = arith.constant 0 : index
    %c0_29 = arith.constant 0 : index
    %82 = vector.load %arg7[%c0_28, %c0_29] : memref<16x32xf32, #tpu.memory_space<vmem>>, vector<16x32xf32>
    tpu.vector_store %arg7[%c0_28, %c0_29], %81 {strides = array<i32>} : memref<16x32xf32, #tpu.memory_space<vmem>>, vector<16x32xf32>,
    return
  }
  func.func @transform_0(%arg0: i32, %arg1: memref<1xi32, #tpu.memory_space<smem>>) -> (i32, i32) {
    %c0_i32 = arith.constant 0 : i32
    %c0_i32_0 = arith.constant 0 : i32
    return %arg0, %c0_i32 : i32, i32
  }
  func.func @transform_1(%arg0: i32, %arg1: memref<1xi32, #tpu.memory_space<smem>>) -> (i32, i32) {
    %c0_i32 = arith.constant 0 : i32
    %c0_i32_0 = arith.constant 0 : i32
    %c0_i32_1 = arith.constant 0 : i32
    return %c0_i32, %c0_i32_0 : i32, i32
  }
  func.func @transform_2(%arg0: i32, %arg1: memref<1xi32, #tpu.memory_space<smem>>) -> (i32, i32) {
    %c0_i32 = arith.constant 0 : i32
    %c0_i32_0 = arith.constant 0 : i32
    %c0_i32_1 = arith.constant 0 : i32
    return %c0_i32, %c0_i32_0 : i32, i32
  }
  func.func @transform_3(%arg0: i32, %arg1: memref<1xi32, #tpu.memory_space<smem>>) -> (i32, i32) {
    %c0_i32 = arith.constant 0 : i32
    %c0_i32_0 = arith.constant 0 : i32
    %c0_i32_1 = arith.constant 0 : i32
    return %c0_i32, %c0_i32_0 : i32, i32
  }
  func.func @transform_4(%arg0: i32, %arg1: memref<1xi32, #tpu.memory_space<smem>>) -> (i32, i32) {
    %c0_i32 = arith.constant 0 : i32
    %c0_i32_0 = arith.constant 0 : i32
    %c0_i32_1 = arith.constant 0 : i32
    return %c0_i32, %c0_i32_0 : i32, i32
  }
  func.func @transform_5(%arg0: i32, %arg1: memref<1xi32, #tpu.memory_space<smem>>) -> (i32, i32) {
    %c0_i32 = arith.constant 0 : i32
    %c0_i32_0 = arith.constant 0 : i32
    return %arg0, %c0_i32 : i32, i32
  }
}

</mosaic_0001>

<bundles_post_ra>
// kernel: tpu_custom_call.1
= control target key start
LH: loop header
LB: loop body
LE: loop exit
PB: predicated region body
PF: predicated region fallthrough
CT: control target
= control target key end

     0   :  { %12 = vsyncpa [#allocation5], 0  ;;  %s463_s0 = inlined_call_operand.<no memory space> [shape: s32[1], index: 0, kind: input, shape index: {}]   ;;  %s464_s1 = inlined_call_operand.hbm [shape: bf16[16,32], index: 1, kind: input, shape index: {}]   ;;  %s465_s2 = inlined_call_operand.hbm [shape: bf16[32,32], index: 2, kind: input, shape index: {}]   ;;  %s466_s3 = inlined_call_operand.vmem [shape: f32[1,32], index: 3, kind: input, shape index: {}]   ;;  %s467_s4 = inlined_call_operand.hbm [shape: bf16[32,32], index: 4, kind: input, shape index: {}]   ;;  %s468_s5 = inlined_call_operand.vmem [shape: f32[1,32], index: 5, kind: input, shape index: {}]   ;;  %s469_s6 = inlined_call_operand.hbm [shape: f32[16,32], index: 6, kind: output, shape index: {}]  }
   0x1   :  { %13 = vsyncpa [#allocation8], 0 }
   0x2   :  { %14 = vsyncpa [#allocation6], 0  ;;  %s32_s23 = sshll.u32 %s465_s2, 4  ;;  %s395_s24 = smov [#allocation7]   ;;  %s33_s23 = int_to_ptr.hbm [resolvable:$true] %s32_s23 }
   0x3   :  { %s34_s25 = sshll.u32 %s395_s24, 4  ;;  %s19_s28 = sshll.u32 %s464_s1, 4  ;;  %s35_s25 = int_to_ptr.vmem [resolvable:$true] %s34_s25  ;;  %s20_s28 = int_to_ptr.hbm [resolvable:$true] %s19_s28 }
   0x4   :  { %s396_s29 = smov 64   ;;  %s397_s30 = smov 4  }
   0x5   :  { %40 = dma.hbm_to_vmem [thread:$0]  %s33_s23, 256, %s35_s25, [#allocation8], %s396_s29, %s396_s29, %s397_s30  }
   0x6   :  { %s398_s7 = smov [#allocation4]   ;;  %s47_s11 = sshll.u32 %s467_s4, 4  ;;  %s48_s11 = int_to_ptr.hbm [resolvable:$true] %s47_s11 }
   0x7   :  { %s21_s8 = sshll.u32 %s398_s7, 4  ;;  %s399_s2 = smov [#allocation9]   ;;  %s22_s8 = int_to_ptr.vmem [resolvable:$true] %s21_s8 }
   0x8   :  { %27 = dma.hbm_to_vmem [thread:$0]  %s20_s28, 128, %s22_s8, [#allocation5], %s396_s29, %s396_s29, %s397_s30  }
   0x9   :  { %s49_s12 = sshll.u32 %s399_s2, 4  ;;  %s50_s12 = int_to_ptr.vmem [resolvable:$true] %s49_s12 }
   0xa   :  { %55 = dma.hbm_to_vmem [thread:$0]  %s48_s11, 256, %s50_s12, [#allocation8], %s396_s29, %s396_s29, %s397_s30  }
   0xb   :  { %389 = dma.done.wait [#allocation5], 128  }
   0xc   :  { %390 = vsyncadd [#allocation5], 4294967168 }
   0xd   :  { %391 = dma.done.wait [#allocation8], 512  }
   0xe   :  { %392 = vsyncadd [#allocation8], 4294966784  ;;  %v280_v0 = vld [vmem:[#allocation7 + $0x8] sm:$0xff]  ;;  %v279_v1 = vld [vmem:[#allocation7] sm:$0xff]  ;;  %vm100_vm0 = vcmask 261120   ;;  %v120_v3 = vlaneseq  ;;  %s400_s16 = smov [#allocation10]  }
   0xf   :  { %110 = vmatpush.bf16.msra.mxu0 %v280_v0  ;;  %v278_v2 = vld [vmem:[#allocation4] sm:$0xff]  ;;  %s132_s13 = smul.u32 2654435761, %s463_s0  ;;  %v281_v19 = vld [vmem:[#allocation9] sm:$0xff]  ;;  %s236_s17 = sshll.u32 %s400_s16, 4  ;;  %s237_s17 = int_to_ptr.vmem [resolvable:$true] %s236_s17 }
  0x10   :  { %v121_v4 = vshrl.u32 %v120_v3, 7  ;;  %v127_v6 = vand.u32 127, %v120_v3  ;;  %v282_v16 = vld [vmem:[#allocation9 + $0x8] sm:$0xff]  ;;  %s401_s20 = smov 128   ;;  %s402_s21 = smov 8  }
  0x11   :  { %v133_v11 = vstv %s132_s13  ;;  %192 = vmatpush.bf16.msra.mxu1 %v282_v16  ;;  %v291_v28 = vld [vmem:[%s466_s3] ss:$0 sm:$0xff] }
  0x12   :  { %v122_v5 = vadd.s32 8, %v121_v4  ;;  %v128_v7 = vmul.u32 32, %v121_v4  ;;  %v292_v62 = vld [vmem:[%s468_s5] ss:$0 sm:$0xff]  ;;  %s238_s5 = sshll.u32 %s469_s6, 4  ;;  %s239_s5 = int_to_ptr.hbm [resolvable:$true] %s238_s5 }
  0x13   :  { %111 = vmatpush.bf16.msra.mxu0 %v279_v1 }
  0x14   :  { %v129_v8 = vmul.u32 32, %v122_v5  ;;  %v130_v9 = vadd.s32 %v128_v7, %v127_v6 }
  0x15   :  { %193 = vmatpush.bf16.msra.mxu1 %v281_v19 }
  0x16   :  { %264 = vmatmul.msk.bf16.vlgmr.msra.gmra.mxu0 %vm100_vm0, %v278_v2  ;;  %v131_v10 = vadd.s32 %v129_v8, %v127_v6  ;;  %v134_v12 = vadd.s32 %v133_v11, %v130_v9 }
  0x18   :  { %v135_v13 = vadd.s32 %v133_v11, %v131_v10  ;;  %v136_v14 = vshrl.u32 %v134_v12, 16  ;;  %v202_v46 = vadd.s32 2246822519, %v134_v12 }
  0x1a   :  { %v137_v15 = vshrl.u32 %v135_v13, 16  ;;  %v138_v17 = vxor.u32 %v136_v14, %v134_v12  ;;  %v204_v47 = vshrl.u32 %v202_v46, 16  ;;  %v203_v49 = vadd.s32 2246822519, %v135_v13 }
  0x1c   :  { %v139_v18 = vxor.u32 %v137_v15, %v135_v13  ;;  %v140_v20 = vmul.u32 2146121005, %v138_v17  ;;  %v206_v48 = vxor.u32 %v204_v47, %v202_v46  ;;  %v205_v51 = vshrl.u32 %v203_v49, 16 }
  0x1e   :  { %v141_v21 = vmul.u32 2146121005, %v139_v18  ;;  %v142_v22 = vshrl.u32 %v140_v20, 15  ;;  %v208_v50 = vmul.u32 2146121005, %v206_v48  ;;  %v207_v53 = vxor.u32 %v205_v51, %v203_v49 }
  0x20   :  { %v143_v23 = vshrl.u32 %v141_v21, 15  ;;  %v144_v24 = vxor.u32 %v142_v22, %v140_v20  ;;  %v210_v52 = vshrl.u32 %v208_v50, 15  ;;  %v209_v55 = vmul.u32 2146121005, %v207_v53 }
  0x22   :  { %v145_v25 = vxor.u32 %v143_v23, %v141_v21  ;;  %v146_v26 = vmul.u32 2221713035, %v144_v24  ;;  %v212_v54 = vxor.u32 %v210_v52, %v208_v50  ;;  %v211_v57 = vshrl.u32 %v209_v55, 15 }
  0x24   :  { %v147_v27 = vmul.u32 2221713035, %v145_v25  ;;  %v148_v30 = vshrl.u32 %v146_v26, 16  ;;  %v214_v56 = vmul.u32 2221713035, %v212_v54  ;;  %v213_v59 = vxor.u32 %v211_v57, %v209_v55 }
  0x26   :  { %v149_v31 = vshrl.u32 %v147_v27, 16  ;;  %v150_v33 = vxor.u32 %v148_v30, %v146_v26  ;;  %v216_v58 = vshrl.u32 %v214_v56, 16  ;;  %v215_v61 = vmul.u32 2221713035, %v213_v59 }
  0x28   :  { %v151_v34 = vxor.u32 %v149_v31, %v147_v27  ;;  %v265_v36 = vxor.u32 2147483648, %v150_v33  ;;  %v218_v60 = vxor.u32 %v216_v58, %v214_v56  ;;  %v217_v1 = vshrl.u32 %v215_v61, 16 }
  0x2a   :  { %v266_v38 = vxor.u32 2147483648, %v151_v34  ;;  %vm154_vm1 = vcmp.lt.s32.totalorder %v265_v36, 0  ;;  %v276_v0 = vxor.u32 2147483648, %v218_v60  ;;  %v219_v4 = vxor.u32 %v217_v1, %v215_v61 }
  0x2c   :  { %vm157_vm2 = vcmp.lt.s32.totalorder %v266_v38, 0  ;;  %vm222_vm3 = vcmp.lt.s32.totalorder %v276_v0, 0  ;;  %v277_v8 = vxor.u32 2147483648, %v219_v4 }
  0x2e   :  { %vm225_vm4 = vcmp.lt.s32.totalorder %v277_v8, 0 }
  0x93   :  { %v113_v29 = vpop.f32.mrf.mxu0 }
  0x94   :  { %v114_v32 = vadd.f32 %v291_v28, %v113_v29 }
  0x96   :  { %v118_v35 = vmax.f32 %v114_v32, 0.0 }
  0x98   :  { %v158_v40 = vmul.f32 2.0, %v118_v35 }
  0x9a   :  { %v160_v43 = vsel %vm154_vm1, %v158_v40, 0.0 }
  0x9b   :  { %v115_v37 = vpop.f32.mrf.mxu0 }
  0x9c   :  { %v116_v39 = vadd.f32 %v291_v28, %v115_v37 }
  0x9e   :  { %v119_v41 = vmax.f32 %v116_v39, 0.0 }
  0xa0   :  { %v159_v42 = vmul.f32 2.0, %v119_v41 }
  0xa2   :  { %v161_v44 = vsel %vm157_vm2, %v159_v42, 0.0 }
  0xa3   :  { %v162_v45 = vpack.c.bf16 %v161_v44, %v160_v43 }
  0xa5   :  { %275 = vmatmul.msk.bf16.vlgmr.msra.gmra.mxu1 %vm100_vm0, %v162_v45 }
 0x122   :  { %v195_v63 = vpop.f32.mrf.mxu1 }
 0x123   :  { %v196_v2 = vadd.f32 %v292_v62, %v195_v63 }
 0x125   :  { %v200_v3 = vmax.f32 %v196_v2, 0.0 }
 0x127   :  { %v226_v5 = vmul.f32 2.0, %v200_v3 }
 0x129   :  { %v228_v6 = vsel %vm222_vm3, %v226_v5, 0.0 }
 0x12a   :  { %230 = vst.msk [vmem:[#allocation10] sm:$0xff] %vm100_vm0, %v228_v6  ;;  %v197_v7 = vpop.f32.mrf.mxu1 }
 0x12b   :  { %v198_v9 = vadd.f32 %v292_v62, %v197_v7 }
 0x12d   :  { %v201_v10 = vmax.f32 %v198_v9, 0.0 }
 0x12f   :  { %v227_v11 = vmul.f32 2.0, %v201_v10 }
 0x131   :  { %v229_v12 = vsel %vm225_vm4, %v227_v11, 0.0 }
 0x132   :  { %231 = vst.msk [vmem:[#allocation10 + $0x8] sm:$0xff] %vm100_vm0, %v229_v12 }
 0x133   :  { %244 = dma.vmem_to_hbm [thread:$0]  %s237_s17, 256, %s239_s5, [#allocation6], %s401_s20, %s401_s20, %s402_s21  }
 0x134   :  { %393 = dma.done.wait [#allocation6], 256  }
 0x135   :  { %394 = vsyncadd [#allocation6], 4294967040 }
 0x136   :  { %249 = vsyncpa [#allocation5], 1 }
 0x137   :  { %250 = vsyncpa [#allocation8], 1 }
 0x138   :  { %251 = vsyncpa [#allocation6], 1 }

</bundles_post_ra>
